<compile_context>
chip_gen: v5e
topology: v5e:2x2
jax: 0.10.0
libtpu: 0.0.40
codegen_flags: <defaults>
</compile_context>

<pallas_src>
import math

import jax
import jax.numpy as jnp
from jax.experimental import pallas as pl
from jax.experimental.pallas import tpu as pltpu

_LANES = 128
_SUBLANES = 8
_PALLAS_MIN_BYTES = 256 * 1024       # below this, pallas_call fixed overhead dominates


def _tile_and_vmem_budget():
    """Per-buffer tile target and scoped-VMEM limit, by chip generation."""
    vmem_phys = 64 * 1024 * 1024
    try:
        vmem_phys = pltpu.get_tpu_info().vmem_capacity_bytes
    except Exception:
        pass
    if vmem_phys >= 96 * 1024 * 1024:                 # v5e / v6e: 128 MiB physical VMEM
        return 8 * 1024 * 1024, 64 * 1024 * 1024
    return 4 * 1024 * 1024, 40 * 1024 * 1024          # v7x (64 MiB/TC) or unknown


_TILE_BYTES, _VMEM_LIMIT = _tile_and_vmem_budget()


def _reduce_markdirty_kernel(x_ref, b4_ref, o_ref):
    # out = x + all_reduce(x) + (x + b) with x = input + b and identity all_reduce
    #     = 3*input + 4*b      (b4_ref already holds 4*b, broadcast over rows)
    o_ref[...] = 3.0 * x_ref[...] + b4_ref[...]


def _round_down8(x):
    return (x // _SUBLANES) * _SUBLANES


def _choose_tiles(rows, cols, itemsize):
    """Pick (tn, tc, grid) for a lane-dense streaming elementwise kernel."""
    # Column tiling only when a single 8-row tile would already blow the tile budget.
    if cols % _LANES == 0 and _SUBLANES * cols * itemsize > _TILE_BYTES:
        tc = max(_LANES, (_TILE_BYTES // (_SUBLANES * itemsize)) // _LANES * _LANES)
    else:
        tc = cols
    grid_c = pl.cdiv(cols, tc)

    if rows <= _SUBLANES:
        return rows, tc, (1, grid_c)   # block == full row extent (allowed by (8,128) rule)

    cap = max(_SUBLANES, _round_down8(_TILE_BYTES // (tc * itemsize)))
    if rows >= 2 * _SUBLANES:
        # Guarantee >= 2 row steps so both TensorCores participate on v7x megacore.
        cap = min(cap, max(_SUBLANES, _round_down8(rows // 2)))
    cap = min(cap, _round_down8(rows)) if rows % _SUBLANES == 0 else min(cap, rows)
    cap = max(cap, _SUBLANES)

    tn = cap
    if rows % _SUBLANES == 0:
        # Prefer a divisor of rows (multiple of 8) near the cap -> no ragged tail tile.
        cand = cap
        while cand >= _SUBLANES:
            if rows % cand == 0:
                if 2 * cand >= cap:
                    tn = cand
                break
            cand -= _SUBLANES
    return tn, tc, (pl.cdiv(rows, tn), grid_c)


@jax.jit
def reduce_with_mark_dirty_forward(model_input: jax.Array, bias: jax.Array) -> jax.Array:
    """model_input: [N, D] float32, bias: [D] float32 -> [N, D] float32."""
    n, d = model_input.shape
    total = n * d
    itemsize = model_input.dtype.itemsize

    # Small-input fallback: a fused XLA elementwise op beats any pallas_call overhead.
    if total * itemsize < _PALLAS_MIN_BYTES:
        return 3.0 * model_input + 4.0 * bias[None, :]

    # Lane-dense view: reinterpret the contiguous [N, D] buffer as [rows, L] with
    # L = lcm(D, 128) whenever it tiles evenly (free row-major reshape in the wrapper),
    # so stores are full 128-lane vst instead of masked vst.msk partial stores.
    lane_block = math.lcm(d, _LANES)
    if total % lane_block == 0 and _SUBLANES * lane_block * itemsize <= _TILE_BYTES:
        rows, cols = total // lane_block, lane_block
        x2d = model_input.reshape(rows, cols)
        b4_row = jnp.tile(4.0 * bias, cols // d).reshape(1, cols)
    else:
        rows, cols = n, d
        x2d = model_input
        b4_row = (4.0 * bias).reshape(1, d)

    tn, tc, grid = _choose_tiles(rows, cols, itemsize)

    out2d = pl.pallas_call(
        _reduce_markdirty_kernel,
        out_shape=jax.ShapeDtypeStruct((rows, cols), x2d.dtype),
        grid=grid,
        in_specs=[
            pl.BlockSpec((tn, tc), lambda i, j: (i, j)),
            pl.BlockSpec((1, tc), lambda i, j: (0, j)),   # scaled bias stays VMEM-resident
        ],
        out_specs=pl.BlockSpec((tn, tc), lambda i, j: (i, j)),
        compiler_params=pltpu.CompilerParams(
            dimension_semantics=("parallel", "parallel"),
            vmem_limit_bytes=_VMEM_LIMIT,
        ),
        cost_estimate=pl.CostEstimate(
            flops=2 * rows * cols,
            transcendentals=0,
            bytes_accessed=(2 * rows * cols + cols) * itemsize,
        ),
    )(x2d, b4_row)

    return out2d.reshape(n, d)


if __name__ == "__main__":
    # Deterministic inputs consistent with the module (bias ~ uniform_(), shape (dim,)).
    dim = 32

    key = jax.random.PRNGKey(0)
    k_in, k_bias, k_small = jax.random.split(key, 3)
    bias = jax.random.uniform(k_bias, (dim,), dtype=jnp.float32)

    # Pallas path: 4096 x 32 f32 = 512 KiB (>= fallback threshold) -> lane-dense
    # (1024, 128) view, tn=512 -> 2 parallel grid steps (both TCs on v7x).
    model_input = jax.random.normal(k_in, (4096, dim), dtype=jnp.float32)
    out = jax.block_until_ready(reduce_with_mark_dirty_forward(model_input, bias))
    ref = 3.0 * (model_input + bias[None, :]) + bias[None, :]   # world_size == 1 forward
    assert out.shape == model_input.shape and out.dtype == jnp.float32
    assert jnp.allclose(out, ref, atol=1e-5, rtol=1e-5)

    # Small-input fallback path at the original test's module-scale shape.
    small_input = jax.random.normal(k_small, (8, dim), dtype=jnp.float32)
    out_small = jax.block_until_ready(reduce_with_mark_dirty_forward(small_input, bias))
    ref_small = 3.0 * (small_input + bias[None, :]) + bias[None, :]
    assert jnp.allclose(out_small, ref_small, atol=1e-5, rtol=1e-5)

    print("KERNEL_OK")
</pallas_src>

<mosaic_0001>
module attributes {stable_mosaic.version = 11 : i64} {
  func.func @_reduce_markdirty_kernel(%arg0: i32, %arg1: i32, %arg2: memref<512x128xf32, #tpu.memory_space<vmem>>, %arg3: memref<1x128xf32, #tpu.memory_space<vmem>>, %arg4: memref<512x128xf32, #tpu.memory_space<vmem>>) attributes {dimension_semantics = [#tpu.dimension_semantics<parallel>, #tpu.dimension_semantics<parallel>], iteration_bounds = array<i64: 2, 1>, scalar_prefetch = 0 : i64, scratch_operands = 0 : i64, tpu.core_type = #tpu.core_type<tc>, window_params = [{transform_indices = @transform_0, window_bounds = array<i64: 512, 128>}, {transform_indices = @transform_1, window_bounds = array<i64: 1, 128>}, {transform_indices = @transform_2, window_bounds = array<i64: 512, 128>}]} {
    %c0 = arith.constant 0 : index
    %c0_0 = arith.constant 0 : index
    %0 = vector.load %arg2[%c0, %c0_0] : memref<512x128xf32, #tpu.memory_space<vmem>>, vector<512x128xf32>
    %cst = arith.constant 3.000000e+00 : f32
    %1 = vector.broadcast %cst : f32 to vector<512x128xf32>
    %2 = arith.mulf %1, %0 : vector<512x128xf32>
    %c0_1 = arith.constant 0 : index
    %c0_2 = arith.constant 0 : index
    %3 = vector.load %arg3[%c0_1, %c0_2] : memref<1x128xf32, #tpu.memory_space<vmem>>, vector<1x128xf32>
    %4 = vector.broadcast %3 : vector<1x128xf32> to vector<512x128xf32>
    %5 = arith.addf %2, %4 : vector<512x128xf32>
    %c0_3 = arith.constant 0 : index
    %c0_4 = arith.constant 0 : index
    %6 = vector.load %arg4[%c0_3, %c0_4] : memref<512x128xf32, #tpu.memory_space<vmem>>, vector<512x128xf32>
    tpu.vector_store %arg4[%c0_3, %c0_4], %5 {strides = array<i32>} : memref<512x128xf32, #tpu.memory_space<vmem>>, vector<512x128xf32>,
    return
  }
  func.func @transform_0(%arg0: i32, %arg1: i32) -> (i32, i32) {
    %c0_i32 = arith.constant 0 : i32
    return %arg0, %arg1 : i32, i32
  }
  func.func @transform_1(%arg0: i32, %arg1: i32) -> (i32, i32) {
    %c0_i32 = arith.constant 0 : i32
    %c0_i32_0 = arith.constant 0 : i32
    return %c0_i32, %arg1 : i32, i32
  }
  func.func @transform_2(%arg0: i32, %arg1: i32) -> (i32, i32) {
    %c0_i32 = arith.constant 0 : i32
    return %arg0, %arg1 : i32, i32
  }
}

</mosaic_0001>

<bundles_post_ra>
// kernel: tile.8
= control target key start
LH: loop header
LB: loop body
LE: loop exit
PB: predicated region body
PF: predicated region fallthrough
CT: control target
= control target key end

     0   :  { %s22_s0 = inlined_call_operand.vmem [shape: f32[32], index: 0, kind: input, shape index: {}]   ;;  %s23_s1 = inlined_call_operand.vmem [shape: f32[4,32], index: 1, kind: output, shape index: {}]  }
   0x1   :  { %v4_v0 = vld [vmem:[%s22_s0] ss:$0 sm:$0xff] }
   0x2   :  { %5 = vst [vmem:[%s23_s1] sm:$0xf] %v4_v0 }

// kernel: tile.9
= control target key start
LH: loop header
LB: loop body
LE: loop exit
PB: predicated region body
PF: predicated region fallthrough
CT: control target
= control target key end

     0   :  { %s37_s8 = smov 32   ;;  %s38_s9 = smov 64   ;;  %vm7_vm0 = vcmask 261120   ;;  %vm13_vm1 = vcmask 1048320   ;;  %vm19_vm2 = vcmask 785920   ;;  %vm25_vm3 = vcmask 523520   ;;  %s55_s0 = inlined_call_operand.vmem [shape: f32[4,32], index: 0, kind: input, shape index: {}]   ;;  %s56_s1 = inlined_call_operand.vmem [shape: f32[1,128], index: 1, kind: output, shape index: {}]  }
   0x1   :  { %v4_v0 = vld [vmem:[%s55_s0] sm:$0xf]  ;;  %s36_s0 = smov 96  }
   0x2   :  { %5 = vst [vmem:[#allocation1] sm:$0xf] %v4_v0 }
   0x9   :  { %v10_v1 = vld [vmem:[#allocation1 + $0x3] sm:$0x1]   ;;  %v22_v2 = vld [vmem:[#allocation1 + $0x1] sm:$0x1]   ;;  %v16_v3 = vld [vmem:[#allocation1 + $0x2] sm:$0x1]  }
   0xa   :  { %11 = vrot.lane.b32.xlu0 %v10_v1, %s36_s0  ;;  %23 = vrot.lane.b32.xlu1 %v22_v2, %s37_s8  ;;  %v6_v4 = vld [vmem:[#allocation1] sm:$0x1]  }
   0xb   :  { %8 = vst.msk [vmem:[#allocation0] sm:$0x1] %vm7_vm0, %v6_v4  }
  0x12   :  { %17 = vrot.lane.b32.xlu0 %v16_v3, %s38_s9 }
  0x7c   :  { %v12_v5 = vpop.permute.xlu0 %11   ;;  %v24_v6 = vpop.permute.xlu1 %23  }
  0x7d   :  { %14 = vst.msk [vmem:[#allocation0] sm:$0x1] %vm13_vm1, %v12_v5  }
  0x84   :  { %v18_v7 = vpop.permute.xlu0 %17  }
  0x85   :  { %20 = vst.msk [vmem:[#allocation0] sm:$0x1] %vm19_vm2, %v18_v7  }
  0x86   :  { %26 = vst.msk [vmem:[#allocation0] sm:$0x1] %vm25_vm3, %v24_v6  }
  0x8d   :  { %v29_v8 = vld [vmem:[#allocation0] sm:$0x1] }
  0x8e   :  { %32 = vst [vmem:[%s56_s1] sm:$0x1] %v29_v8 }

</bundles_post_ra>
